<compile_context>
chip_gen: v5e
topology: v5e:2x2
jax: 0.10.0
libtpu: 0.0.40
codegen_flags: <defaults>
</compile_context>

<pallas_src>
import jax
import jax.numpy as jnp
from jax.experimental import pallas as pl
from jax.experimental.pallas import tpu as pltpu


def _pos_embed_kernel(w_ref, o_ref):
    # w_ref: (ST, d_model) tile of W_pos[:seq]
    # o_ref: (BT, ST, d_model) output block — broadcast across the batch tile.
    o_ref[...] = jnp.broadcast_to(w_ref[...][None, :, :], o_ref.shape)


def _choose_tiles(batch: int, seq: int, d_model: int, itemsize: int):
    """Pick (BT, ST) so blocks are large (amortise ~0.35us/step overhead) but
    comfortably fit VMEM even on v7x (64 MiB physical / 32 MiB scoped)."""
    row_bytes = d_model * itemsize  # one seq row of the table / output

    # Seq tile: multiple of 8 (sublane constraint), capped so the input block
    # stays ~<=1 MiB; if seq is not a multiple of 8, use the full dim (allowed).
    if seq % 8 == 0:
        st_budget = max(8, ((1 << 20) // max(row_bytes, 1)) // 8 * 8)
        st = min(seq, st_budget, 512)
    else:
        st = seq

    # Batch tile: target ~2 MiB per output block (double-buffered -> ~4 MiB).
    blk_bytes = st * row_bytes
    bt = max(1, min(batch, (2 << 20) // max(blk_bytes, 1)))
    return bt, st


def pos_embed(tokens: jax.Array, w_pos: jax.Array, *,
              min_bytes_for_pallas: int = 1 << 20) -> jax.Array:
    """tokens: [batch, seq] int (values unused); w_pos: [n_ctx, d_model].
    Returns [batch, seq, d_model] (== W_pos[:seq] broadcast over batch)."""
    batch, seq = tokens.shape
    n_ctx, d_model = w_pos.shape
    assert seq <= n_ctx

    itemsize = jnp.dtype(w_pos.dtype).itemsize
    out_bytes = batch * seq * d_model * itemsize

    # Slice outside the kernel: cheap XLA slice, and the Pallas blocks then
    # tile an array whose seq dim equals exactly `seq` (no n_ctx constraint).
    w_slice = w_pos[:seq]

    if out_bytes < min_bytes_for_pallas:
        # Tiny output: pallas_call launch/pipeline-prime cost dwarfs the write;
        # let XLA fuse the broadcast into downstream consumers.
        return jnp.broadcast_to(w_slice[None, :, :], (batch, seq, d_model))

    bt, st = _choose_tiles(batch, seq, d_model, itemsize)
    n_bt = pl.cdiv(batch, bt)
    n_st = pl.cdiv(seq, st)

    in_spec_kwargs = {}
    if n_st == 1:
        # Constant block index (0, 0): nothing to prefetch, halve input VMEM.
        in_spec_kwargs["pipeline_mode"] = pl.Buffered(1)

    in_spec = pl.BlockSpec((st, d_model), lambda bi, si: (si, 0),
                           **in_spec_kwargs)
    out_spec = pl.BlockSpec((bt, st, d_model), lambda bi, si: (bi, si, 0))

    cost = pl.CostEstimate(
        flops=0,
        transcendentals=0,
        bytes_accessed=int(out_bytes + seq * d_model * itemsize),
    )

    return pl.pallas_call(
        _pos_embed_kernel,
        out_shape=jax.ShapeDtypeStruct((batch, seq, d_model), w_pos.dtype),
        grid_spec=pltpu.PrefetchScalarGridSpec(
            num_scalar_prefetch=0,
            grid=(n_bt, n_st),
            in_specs=[in_spec],
            out_specs=out_spec,
        ),
        compiler_params=pltpu.CompilerParams(
            # Both axes are independent: lets v7x shard them across its 2 TCs.
            dimension_semantics=("parallel", "parallel"),
        ),
        cost_estimate=cost,
    )(w_slice)


def _ref(tokens, w_pos):
    batch, seq = tokens.shape
    d_model = w_pos.shape[1]
    return jnp.broadcast_to(w_pos[:seq][None, :, :], (batch, seq, d_model))


if __name__ == "__main__":
    # Small Config-consistent shapes: n_ctx=64, d_model=128, batch=2, seq=8
    n_ctx, d_model = 64, 128
    init_range = 0.02

    key = jax.random.PRNGKey(0)
    k_w, k_tok1, k_tok2 = jax.random.split(key, 3)

    w_pos = (init_range * jax.random.normal(k_w, (n_ctx, d_model))).astype(jnp.float32)

    # Case 1: seq multiple of 8 — force the Pallas path (threshold=0).
    tokens = jax.random.randint(k_tok1, (2, 8), 0, 1000, dtype=jnp.int32)
    out = jax.block_until_ready(pos_embed(tokens, w_pos, min_bytes_for_pallas=0))
    ref = _ref(tokens, w_pos)
    assert out.shape == (2, 8, d_model) and out.dtype == jnp.float32
    assert jnp.allclose(out, ref)

    # Case 2: seq NOT a multiple of 8 (full-dim seq block path), Pallas forced.
    tokens2 = jax.random.randint(k_tok2, (4, 10), 0, 1000, dtype=jnp.int32)
    out2 = jax.block_until_ready(pos_embed(tokens2, w_pos, min_bytes_for_pallas=0))
    assert jnp.allclose(out2, _ref(tokens2, w_pos))

    # Case 3: default threshold on a tiny problem -> fused jnp broadcast path.
    out3 = jax.block_until_ready(pos_embed(tokens, w_pos))
    assert jnp.allclose(out3, ref)

    print("KERNEL_OK")
</pallas_src>

<mosaic_0001>
module attributes {stable_mosaic.version = 11 : i64} {
  func.func @_pos_embed_kernel(%arg0: i32, %arg1: i32, %arg2: memref<8x128xf32, #tpu.memory_space<vmem>>, %arg3: memref<2x8x128xf32, #tpu.memory_space<vmem>>) attributes {dimension_semantics = [#tpu.dimension_semantics<parallel>, #tpu.dimension_semantics<parallel>], iteration_bounds = array<i64: 1, 1>, scalar_prefetch = 0 : i64, scratch_operands = 0 : i64, tpu.core_type = #tpu.core_type<tc>, window_params = [{pipeline_mode = #tpu.pipeline_mode<synchronous>, transform_indices = @transform_0, window_bounds = array<i64: 8, 128>}, {transform_indices = @transform_1, window_bounds = array<i64: 2, 8, 128>}]} {
    %c0 = arith.constant 0 : index
    %c0_0 = arith.constant 0 : index
    %0 = vector.load %arg2[%c0, %c0_0] : memref<8x128xf32, #tpu.memory_space<vmem>>, vector<8x128xf32>
    %1 = vector.shape_cast %0 : vector<8x128xf32> to vector<1x8x128xf32>
    %2 = vector.shape_cast %1 : vector<1x8x128xf32> to vector<1x8x128xf32>
    %3 = vector.broadcast %2 : vector<1x8x128xf32> to vector<2x8x128xf32>
    %c0_1 = arith.constant 0 : index
    %c0_2 = arith.constant 0 : index
    %c0_3 = arith.constant 0 : index
    %4 = vector.load %arg3[%c0_1, %c0_2, %c0_3] : memref<2x8x128xf32, #tpu.memory_space<vmem>>, vector<2x8x128xf32>
    tpu.vector_store %arg3[%c0_1, %c0_2, %c0_3], %3 {strides = array<i32>} : memref<2x8x128xf32, #tpu.memory_space<vmem>>, vector<2x8x128xf32>,
    return
  }
  func.func @transform_0(%arg0: i32, %arg1: i32) -> (i32, i32) {
    %c0_i32 = arith.constant 0 : i32
    %c0_i32_0 = arith.constant 0 : i32
    return %arg1, %c0_i32 : i32, i32
  }
  func.func @transform_1(%arg0: i32, %arg1: i32) -> (i32, i32, i32) {
    %c0_i32 = arith.constant 0 : i32
    %c0_i32_0 = arith.constant 0 : i32
    return %arg0, %arg1, %c0_i32 : i32, i32, i32
  }
}

</mosaic_0001>

<bundles_post_ra>
// kernel: tpu_custom_call.1
= control target key start
LH: loop header
LB: loop body
LE: loop exit
PB: predicated region body
PF: predicated region fallthrough
CT: control target
= control target key end

     0   :  { %6 = vsyncpa [#allocation3], 0  ;;  %s121_s0 = inlined_call_operand.hbm [shape: f32[8,128], index: 0, kind: input, shape index: {}]   ;;  %s122_s1 = inlined_call_operand.hbm [shape: f32[2,8,128], index: 1, kind: output, shape index: {}]  }
   0x1   :  { %7 = vsyncpa [#allocation4], 0  ;;  %s13_s8 = sshll.u32 %s121_s0, 4  ;;  %s101_s9 = smov [#allocation2]   ;;  %s14_s8 = int_to_ptr.hbm [resolvable:$true] %s13_s8 }
   0x2   :  { %s15_s10 = sshll.u32 %s101_s9, 4  ;;  %s16_s10 = int_to_ptr.vmem [resolvable:$true] %s15_s10 }
   0x3   :  { %18 = dma.hbm_to_vmem [thread:$0]  %s14_s8, 128, %s16_s10, [#allocation3]  }
   0x4   :  { %97 = dma.done.wait [#allocation3], 128  }
   0x5   :  { %98 = vsyncadd [#allocation3], 4294967168  ;;  %s102_s11 = smov [#allocation5]   ;;  %s32_s15 = sshll.u32 %s122_s1, 4  ;;  %v23_v0 = vld [vmem:[#allocation2] sm:$0xff]  ;;  %s33_s15 = int_to_ptr.hbm [resolvable:$true] %s32_s15 }
   0x6   :  { %s30_s12 = sshll.u32 %s102_s11, 4  ;;  %24 = vst [vmem:[#allocation5] sm:$0xff] %v23_v0  ;;  %s103_s16 = smov 128   ;;  %s31_s12 = int_to_ptr.vmem [resolvable:$true] %s30_s12 }
   0x7   :  { %25 = vst [vmem:[#allocation5 + $0x8] sm:$0xff] %v23_v0  ;;  %s104_s0 = smov 8  }
   0x8   :  { %38 = dma.vmem_to_hbm [thread:$0]  %s31_s12, 256, %s33_s15, [#allocation4], %s103_s16, %s103_s16, %s104_s0  }
   0x9   :  { %99 = dma.done.wait [#allocation4], 256  }
   0xa   :  { %100 = vsyncadd [#allocation4], 4294967040 }
   0xb   :  { %43 = vsyncpa [#allocation3], 1 }
   0xc   :  { %44 = vsyncpa [#allocation4], 1 }

</bundles_post_ra>
